<compile_context>
chip_gen: v5e
topology: v5e:2x2
jax: 0.10.0
libtpu: 0.0.40
codegen_flags: <defaults>
</compile_context>

<pallas_src>
import functools

import jax
import jax.numpy as jnp
from jax.experimental import pallas as pl
from jax.experimental.pallas import tpu as pltpu


_VMEM_LIMIT_BYTES = 32 * 1024 * 1024       # explicit scoped-VMEM request (all gens)
_X_DBLBUF_BUDGET = _VMEM_LIMIT_BYTES // 2   # double-buffered x must fit in ~half
_X_TILE_TARGET_BYTES = 4 * 1024 * 1024      # aim for multi-MiB x tiles per step


def _round_up(n, m):
    return ((n + m - 1) // m) * m


def _autosize_tile_b(B, D, itemsize):
    """Pick a batch tile: ~4 MiB of x per step, double-buffer under budget."""
    padded_D = _round_up(D, 128)  # lane padding of the x VMEM buffer
    tb = _X_TILE_TARGET_BYTES // max(1, itemsize * D)
    tb = min(tb, _X_DBLBUF_BUDGET // max(1, 2 * itemsize * padded_D))
    tb = min(tb, _round_up(B, 8))
    return max(8, (tb // 8) * 8)


def prediction_kernel(x_ref, w_ref, b_ref, o_ref):
    # x_ref: (tb, D), w_ref: (1, D), b_ref: (1, 1), o_ref: (tb, 1)
    x = x_ref[...].astype(jnp.float32)
    w = w_ref[...].astype(jnp.float32)          # broadcasts over the batch tile
    acc = jnp.sum(x * w, axis=-1, keepdims=True)  # VPU mul + XLU lane reduce
    o_ref[...] = (acc + b_ref[...].astype(jnp.float32)).astype(o_ref.dtype)


@functools.partial(jax.jit, static_argnames=("tile_b",))
def prediction_forward(x, w, b, *, tile_b=None):
    """x: (B, D); w: (1, D) (PyTorch nn.Linear weight layout); b: (1,) or (1, 1)."""
    B, D = x.shape
    w = jnp.reshape(w, (1, D))   # (1, D) and (D, 1) hold the same D values
    b = jnp.reshape(b, (1, 1))

    if tile_b is None:
        tb = _autosize_tile_b(B, D, x.dtype.itemsize)
    else:
        tb = max(8, (min(tile_b, _round_up(B, 8)) // 8) * 8)

    num_tiles = pl.cdiv(B, tb)
    padded_B = num_tiles * tb   # only the OUTPUT is padded; x is streamed as-is

    out = pl.pallas_call(
        prediction_kernel,
        out_shape=jax.ShapeDtypeStruct((padded_B, 1), x.dtype),
        grid=(num_tiles,),
        in_specs=[
            pl.BlockSpec((tb, D), lambda i: (i, 0)),  # batch-tiled activations
            pl.BlockSpec((1, D), lambda i: (0, 0)),   # weight: VMEM-resident
            pl.BlockSpec((1, 1), lambda i: (0, 0)),   # bias:   VMEM-resident
        ],
        out_specs=pl.BlockSpec((tb, 1), lambda i: (i, 0)),
        compiler_params=pltpu.CompilerParams(
            dimension_semantics=("parallel",),
            vmem_limit_bytes=_VMEM_LIMIT_BYTES,
        ),
        cost_estimate=pl.CostEstimate(
            flops=2 * B * D,
            transcendentals=0,
            bytes_accessed=x.dtype.itemsize * (B * D + D)
            + b.dtype.itemsize
            + x.dtype.itemsize * B,
        ),
    )(x, w, b)

    return out[:B]


def prediction_reference(x, w, b):
    """Pure-JAX reference matching the PyTorch forward (w in (1, D) layout)."""
    return x @ jnp.reshape(w, (1, -1)).T + jnp.reshape(b, (1, 1))


if __name__ == "__main__":
    # Small deterministic example: batch=18 (NOT a multiple of the tile) and
    # input_dim=32; tile_b=8 -> 3 grid steps with a ragged last input tile,
    # exercising the no-pad edge handling.
    B, D = 18, 32

    key = jax.random.PRNGKey(0)
    kx, kw, kb = jax.random.split(key, 3)

    x = jax.random.normal(kx, (B, D), jnp.float32)
    w = jax.random.normal(kw, (1, D), jnp.float32) * 0.1  # nn.Linear (out=1, in=D)
    b = jax.random.normal(kb, (1, 1), jnp.float32) * 0.1

    out = prediction_forward(x, w, b, tile_b=8)
    out = jax.block_until_ready(out)

    ref = prediction_reference(x, w, b)
    assert out.shape == (B, 1), out.shape
    assert jnp.allclose(out, ref, atol=1e-5, rtol=1e-5), "mismatch vs reference"

    # Also check the autosized-tile path (single tile covering the batch).
    out2 = jax.block_until_ready(prediction_forward(x, w, b))
    assert jnp.allclose(out2, ref, atol=1e-5, rtol=1e-5), "mismatch (autosized tile)"

    print("KERNEL_OK")
</pallas_src>

<mosaic_0001>
module attributes {stable_mosaic.version = 11 : i64} {
  func.func @prediction_kernel(%arg0: i32, %arg1: memref<8x32xf32, #tpu.memory_space<vmem>>, %arg2: memref<1x32xf32, #tpu.memory_space<vmem>>, %arg3: memref<1x1xf32, #tpu.memory_space<vmem>>, %arg4: memref<8x1xf32, #tpu.memory_space<vmem>>) attributes {dimension_semantics = [#tpu.dimension_semantics<parallel>], iteration_bounds = array<i64: 3>, scalar_prefetch = 0 : i64, scratch_operands = 0 : i64, tpu.core_type = #tpu.core_type<tc>, window_params = [{transform_indices = @transform_0, window_bounds = array<i64: 8, 32>}, {pipeline_mode = #tpu.pipeline_mode<synchronous>, transform_indices = @transform_1, window_bounds = array<i64: 1, 32>}, {pipeline_mode = #tpu.pipeline_mode<synchronous>, transform_indices = @transform_2, window_bounds = array<i64: 1, 1>}, {transform_indices = @transform_3, window_bounds = array<i64: 8, 1>}]} {
    %c0 = arith.constant 0 : index
    %c0_0 = arith.constant 0 : index
    %0 = vector.load %arg1[%c0, %c0_0] : memref<8x32xf32, #tpu.memory_space<vmem>>, vector<8x32xf32>
    %c0_1 = arith.constant 0 : index
    %c0_2 = arith.constant 0 : index
    %1 = vector.load %arg2[%c0_1, %c0_2] : memref<1x32xf32, #tpu.memory_space<vmem>>, vector<1x32xf32>
    %2 = vector.broadcast %1 : vector<1x32xf32> to vector<8x32xf32>
    %3 = arith.mulf %0, %2 : vector<8x32xf32>
    %cst = arith.constant dense<0.000000e+00> : vector<8xf32>
    %4 = vector.multi_reduction <add>, %3, %cst [1] : vector<8x32xf32> to vector<8xf32>
    %5 = vector.shape_cast %4 : vector<8xf32> to vector<8x1xf32>
    %c0_3 = arith.constant 0 : index
    %c0_4 = arith.constant 0 : index
    %6 = vector.load %arg3[%c0_3, %c0_4] : memref<1x1xf32, #tpu.memory_space<vmem>>, vector<1x1xf32>
    %7 = vector.broadcast %6 : vector<1x1xf32> to vector<8x1xf32>
    %8 = arith.addf %5, %7 : vector<8x1xf32>
    %c0_5 = arith.constant 0 : index
    %c0_6 = arith.constant 0 : index
    %9 = vector.load %arg4[%c0_5, %c0_6] : memref<8x1xf32, #tpu.memory_space<vmem>>, vector<8x1xf32>
    tpu.vector_store %arg4[%c0_5, %c0_6], %8 {strides = array<i32>} : memref<8x1xf32, #tpu.memory_space<vmem>>, vector<8x1xf32>,
    return
  }
  func.func @transform_0(%arg0: i32) -> (i32, i32) {
    %c0_i32 = arith.constant 0 : i32
    %c0_i32_0 = arith.constant 0 : i32
    return %arg0, %c0_i32 : i32, i32
  }
  func.func @transform_1(%arg0: i32) -> (i32, i32) {
    %c0_i32 = arith.constant 0 : i32
    %c0_i32_0 = arith.constant 0 : i32
    %c0_i32_1 = arith.constant 0 : i32
    return %c0_i32, %c0_i32_0 : i32, i32
  }
  func.func @transform_2(%arg0: i32) -> (i32, i32) {
    %c0_i32 = arith.constant 0 : i32
    %c0_i32_0 = arith.constant 0 : i32
    %c0_i32_1 = arith.constant 0 : i32
    return %c0_i32, %c0_i32_0 : i32, i32
  }
  func.func @transform_3(%arg0: i32) -> (i32, i32) {
    %c0_i32 = arith.constant 0 : i32
    %c0_i32_0 = arith.constant 0 : i32
    return %arg0, %c0_i32 : i32, i32
  }
}

</mosaic_0001>

<bundles_post_ra>
// kernel: prediction_forward.1
= control target key start
LH: loop header
LB: loop body
LE: loop exit
PB: predicated region body
PF: predicated region fallthrough
CT: control target
= control target key end

     0   :  { %s509_s0 = inlined_call_operand.hbm [shape: f32[18,32], index: 0, kind: input, shape index: {}]   ;;  %s510_s1 = inlined_call_operand.vmem [shape: f32[1,32], index: 1, kind: input, shape index: {}]   ;;  %s511_s2 = inlined_call_operand.<no memory space> [shape: f32[1,1], index: 2, kind: input, shape index: {}]   ;;  %s512_s3 = inlined_call_operand.vmem [shape: f32[24,1], index: 3, kind: output, shape index: {}]  }
   0x1   :  { %v8_v0 = vstv %s511_s2 }
   0x2   :  { %9 = vst [vmem:[#allocation2] sm:$0x1] %v8_v0 }
   0x3   :  { %10 = vsyncpa [#allocation4], 0 }
   0x4   :  { %12 = vsyncpa [#allocation4 + $0x1], 0  ;;  %s412_s14 = smov 0   ;;  %s414_s15 = smov 0  }
   0x5   :  { %s416_s16 = smov 0   ;;  %s418_s17 = smov 0  }
   0x6 LB: > { %s431_s2 = sadd.s32 4294967295, %s387_s17   ;;  %s434_s18 = sadd.s32 1, %s387_s17   ;;  %s387_s17 = sphi %s418_s17, %s519_s17   ;;  %s383_s16 = sphi %s416_s16, %s518_s16   ;;  %s379_s15 = sphi %s414_s15, %s517_s15   ;;  %s375_s14 = sphi %s412_s14, %s516_s14  }
   0x7   : > { %s22_s19 = ssub.s32 %s387_s17, %s434_s18  ;;  %s25_s20 = sadd.s32 1, %s383_s16 }
   0x8   : > { %p23_p0 = scmp.eq.s32.totalorder %s22_s19, 0  ;;  %p32_p1 = scmp.ne.s32.totalorder %s383_s16, %s379_s15 }
   0x9   : > { %p33_p2 = scmp.eq.s32.totalorder %s387_s17, 0  ;;  %p38_p3 = scmp.ne.s32.totalorder %s379_s15, %s375_s14 }
   0xa   : > { %s444_s21 = scalar_select %p23_p0, %s383_s16, %s25_s20  }
   0xb   : > { %p446_p4 = por %p33_p2, %p32_p1  ;;  %p39_p5 = scmp.eq.s32.totalorder %s431_s2, 0 }
   0xc   : > { %p288_p6 = scmp.lt.s32.totalorder %s387_s17, 3  ;;  %s136_s24 = sand.u32 1, %s383_s16  }
   0xd   : > { %p452_p7 = por %p39_p5, %p38_p3  ;;  %s275_s25 = sshll.u32 %s136_s24, 3 }
   0xe   : > { %s276_s26 = sshll.u32 %s387_s17, 3  ;;  %s140_s30 = scalar_lea.vmem [#allocation3], %s275_s25 }
   0xf   : > { %s144_s29 = scalar_lea.hbm %s509_s0, %s276_s26  ;;  %s148_s4 = sshll.u32 %s140_s30, 4  ;;  %s149_s4 = int_to_ptr.vmem [resolvable:$true] %s148_s4 }
  0x10   : > { %s146_s5 = sshll.u32 %s144_s29, 4  ;;  %p463_p8 = pnand %p288_p6, %p446_p4  ;;  %s147_s5 = int_to_ptr.hbm [resolvable:$true] %s146_s5 }
  0x11   : > { %p277_p9 = scmp.ge.s32.totalorder %s387_s17, 1  ;;  %p153_p10 = scmp.lt.s32.totalorder %s387_s17, 4 }
  0x12   : > { %s137_s7 = scalar_lea.sflag [#allocation4], %s136_s24  ;;  %s323_s8 = sshra.s32 %s147_s5, 4  ;;  %s324_s8 = int_to_ptr.hbm [resolvable:$true] %s323_s8 }
  0x13   : > { %s325_s9 = scalar_lea.hbm %s324_s8, 8  ;;  %p327_p12 = pneg %p463_p8 }
  0x14   : > { %p326_p11 = scmp.ne.s32.totalorder %s324_s8, %s325_s9  ;;  %s330_s12 = scalar_lea.hbm %s509_s0, 24 }
  0x15   : > { %p331_p1 = scmp.lt.s32.totalorder %s324_s8, %s509_s0  ;;  %p332_p2 = scmp.lt.s32.totalorder %s330_s12, %s325_s9 }
  0x16   : > { %p328_p13 = pnand %p327_p12, %p326_p11 }
  0x17   : > { %p333_p3 = por %p332_p2, %p331_p1 }
  0x18   : > { %p329_p0 = pneg %p328_p13 }
  0x1a   : > { %p334_p4 = pnand %p333_p3, %p329_p0 }
  0x1c   : > { %337 = shalt.err (!%p334_p4)
}
  0x1d   : > { %287 = dma.hbm_to_vmem [thread:$0]  (!%p463_p8), %s147_s5, 128, %s149_s4, %s137_s7  }
  0x1e   : > { %p154_p5 = pnand %p277_p9, %p153_p10 }
  0x1f   : > { %s159_s19 = sand.u32 (!%p154_p5), 1, %s379_s15  }
  0x20   : > { %157 = sbr.rel (%p154_p5) target bundleno = 161 (0xa1), region = 32  ;;  %s278_s20 = sshll.u32 (!%p154_p5), %s159_s19, 3 }
  0x21   : > { %s160_s22 = scalar_lea.sflag (!%p154_p5), [#allocation4], %s159_s19  ;;  %s163_s24 = scalar_lea.vmem (!%p154_p5), [#allocation3], %s278_s20 }
  0x25   : > { %370 = dma.done.wait (%p452_p7), %s160_s22, 128  }
  0x26   : > { %372 = vsyncadd (%p452_p7), %s160_s22, 4294967168  ;;  %v190_v1 = vld [vmem:[%s163_s24] sm:$0xff]  ;;  %v321_v2 = vld [vmem:[%s510_s1] ss:$0 sm:$0xff]  ;;  %vm196_vm0 = vcmask 261120   ;;  %p186_p6 = scmp.lt.s32.totalorder %s431_s2, 2 }
  0x27   : > { %v195_v3 = vmul.f32 %v321_v2, %v190_v1  ;;  %v322_v5 = vld [vmem:[#allocation2] ss:$0 sm:$0xff]  ;;  %vm205_vm1 = vcmask 7168  }
  0x28   : > { %s521_s2 = smov (!%p186_p6, %s431_s2), 2 }
  0x29   : > { %v197_v4 = vsel %vm196_vm0, %v195_v3, 0.0  ;;  %s279_s17 = sshll.u32 %s521_s2, 3 }
  0x2a   : > { %198 = vadd.xlane.f32.xlu0 %v197_v4  ;;  %s189_s23 = scalar_lea.vmem %s512_s3, %s279_s17 }
  0x9d   : > { %v199_v6 = vpop.xlane.xlu0 %198 }
  0x9e   : > { %v204_v7 = vadd.f32 %v322_v5, %v199_v6 }
  0xa0   : > { %206 = vst.msk [vmem:[%s189_s23] sm:$0xff] %vm205_vm1, %v204_v7 }
  0xa1 PF: > { %p15_p7 = scmp.ge.s32.totalorder %s434_s18, 5   ;;  %s516_s14 = smov %s379_s15 }
  0xa2   : > { %s517_s15 = smov %s383_s16  ;;  %s518_s16 = smov %s444_s21 }
  0xa3   : > { %s519_s17 = smov %s434_s18  ;;  %17 = sbr.rel (!%p15_p7) target bundleno = 6 (0x6), region = 72 }
  0xa8   :  { %226 = vsyncpa [#allocation4], 1 }
  0xa9   :  { %228 = vsyncpa [#allocation4 + $0x1], 1 }

</bundles_post_ra>
